<compile_context>
chip_gen: v7x
topology: tpu7x:2x2x1
jax: 0.10.0
libtpu: 0.0.40
codegen_flags: <defaults>
</compile_context>

<pallas_src>
import math
import functools

import jax
import jax.numpy as jnp
from jax.experimental import pallas as pl
from jax.experimental.pallas import tpu as pltpu


def _tpu_vmem_capacity_bytes():
    """Physical VMEM per core, with a conservative fallback."""
    try:
        info = pltpu.get_tpu_info()
        cap = getattr(info, "vmem_capacity_bytes", None)
        if cap:
            return int(cap)
    except Exception:
        pass
    return 128 * 1024 * 1024


def _styled_conv_kernel(w_ref,       # (1, K, K*Cin, Cout) bf16  per-batch modulated weight
                        abias_ref,   # (1, Cout)           f32   FusedLeakyReLU bias
                        x_ref,       # (1, Fp, K*Cin)      bf16  packed padded input (this batch)
                        noise_ref,   # (1, 1, Th*Wp, 1)    bf16  noise * noise_w (this tile)
                        out_ref,     # (1, 1, Th*Wp, Cout) bf16
                        *, K, Wp, Th, neg_slope, act_scale):
    t = pl.program_id(1)
    ThWp = Th * Wp
    Cout = out_ref.shape[-1]
    row0 = t * Th

    # --- conv: K row-tap matmuls, contraction K*Cin, bf16 operands / f32 acc --
    acc = jnp.zeros((ThWp, Cout), jnp.float32)
    for ky in range(K):
        # Wp % 8 == 0 -> every tap slice start is sublane(8)-aligned.
        start = pl.multiple_of((row0 + ky) * Wp, 8)
        x_tap = x_ref[0, pl.ds(start, ThWp), :]                 # (Th*Wp, K*Cin)
        acc = acc + jnp.dot(x_tap, w_ref[0, ky],
                            preferred_element_type=jnp.float32)

    # --- NoiseInjection + FusedLeakyReLU (f32 elementwise tail) ---------------
    y = acc + noise_ref[0, 0].astype(jnp.float32)               # (Th*Wp,1) bcast over Cout
    y = y + abias_ref[...]                                      # (1,Cout)  bcast over pixels
    y = jnp.where(y >= 0, y, neg_slope * y) * act_scale
    out_ref[0, 0] = y.astype(out_ref.dtype)


def styled_conv(x, style, noise, params, *, kernel_size, row_tile=None):
    """StyledConv forward (upsample=False, demodulate=True, non-simple modulation)."""
    B, Cin, H, W = x.shape
    D = style.shape[1]
    conv_w = params["conv_w"]                 # (1, Cout, Cin, K, K)
    Cout = conv_w.shape[1]
    K = kernel_size
    p = K // 2
    KCin = K * Cin

    conv_scale = 1.0 / math.sqrt(Cin * K * K)  # ModulatedConv2d.scale
    mod_scale = 1.0 / math.sqrt(D)             # EqualLinear.scale (lr_mul=1)

    # --- generation-aware budgets --------------------------------------------
    vmem_cap = _tpu_vmem_capacity_bytes()
    vmem_limit = (3 * vmem_cap) // 4           # 96 MiB on 128 MiB chips, 48 MiB on v7x
    pix_cap = 4096 if vmem_cap >= 96 * 1024 * 1024 else 2048

    Wp = ((W + 7) // 8) * 8                    # output-column count, multiple of 8

    if row_tile is None:
        row_tile = H
        for cand in range(H, 0, -1):           # largest divisor under the pixel cap
            if H % cand == 0 and cand * Wp <= pix_cap:
                row_tile = cand
                break
    Th = int(row_tile)
    assert H % Th == 0, "row_tile must divide H"
    nT = H // Th
    ThWp = Th * Wp                             # multiple of 8 since Wp % 8 == 0

    # --- per-batch modulated + demodulated weight (tiny; f32 in XLA) ----------
    s = jnp.dot(style.astype(jnp.float32),
                (params["mod_w"].astype(jnp.float32) * mod_scale).T,
                precision=jax.lax.Precision.HIGHEST) \
        + params["mod_b"].astype(jnp.float32)                                   # (B, Cin)
    w = conv_scale * conv_w[0].astype(jnp.float32)[None] * s[:, None, :, None, None]
    demod = jax.lax.rsqrt(jnp.sum(w * w, axis=(2, 3, 4), keepdims=True) + 1e-8)
    w = w * demod                                                               # (B,Cout,Cin,K,K)
    # -> (B, Ky, Kx*Cin, Cout); lane index kx*Cin + c matches the packed input.
    wk = jnp.transpose(w, (0, 3, 4, 2, 1)).reshape(B, K, KCin, Cout).astype(jnp.bfloat16)

    abias = params["act_b"].reshape(1, Cout).astype(jnp.float32)

    # --- input packing: NCHW -> NHWC pad -> kx taps packed into the lane axis -
    x_nhwc = jnp.transpose(x, (0, 2, 3, 1))                                     # (B,H,W,Cin)
    Hpad = H + 2 * p
    xp = jnp.pad(x_nhwc, ((0, 0), (p, p), (p, Wp - W + p), (0, 0)))             # (B,Hpad,Wp+2p,Cin)
    x_packed = jnp.concatenate([xp[:, :, kx:kx + Wp, :] for kx in range(K)],
                               axis=-1)                                         # (B,Hpad,Wp,K*Cin)
    Fp = Hpad * Wp
    x_packed = x_packed.reshape(B, Fp, KCin).astype(jnp.bfloat16)

    # --- noise: fold noise_w on host, pad width, row-tile, bf16 ---------------
    nscaled = (noise * params["noise_w"].reshape(())).astype(jnp.float32)
    nscaled = jnp.pad(nscaled, ((0, 0), (0, 0), (0, 0), (0, Wp - W)))
    noise_t = nscaled[:, 0].reshape(B, nT, ThWp)[..., None].astype(jnp.bfloat16)

    kernel = functools.partial(_styled_conv_kernel, K=K, Wp=Wp, Th=Th,
                               neg_slope=0.2, act_scale=math.sqrt(2.0))

    out4 = pl.pallas_call(
        kernel,
        out_shape=jax.ShapeDtypeStruct((B, nT, ThWp, Cout), jnp.bfloat16),
        grid=(B, nT),
        in_specs=[
            pl.BlockSpec((1, K, KCin, Cout), lambda b, t: (b, 0, 0, 0)),   # per-batch weight
            pl.BlockSpec((1, Cout), lambda b, t: (0, 0)),                  # act bias
            pl.BlockSpec((1, Fp, KCin), lambda b, t: (b, 0, 0)),           # packed input (resident/batch)
            pl.BlockSpec((1, 1, ThWp, 1), lambda b, t: (b, t, 0, 0)),      # noise tile
        ],
        out_specs=pl.BlockSpec((1, 1, ThWp, Cout), lambda b, t: (b, t, 0, 0)),
        compiler_params=pltpu.CompilerParams(
            # No cross-iteration carry anymore (weights precomputed), so both
            # axes can be split across cores.
            dimension_semantics=("parallel", "parallel"),
            vmem_limit_bytes=vmem_limit),
    )(wk, abias, x_packed, noise_t)

    # (B, nT, Th*Wp, Cout) -> drop padded columns -> NCHW (epilogue runs in bf16)
    out5 = out4.reshape(B, nT, Th, Wp, Cout)[:, :, :, :W, :]
    out = jnp.transpose(out5, (0, 4, 1, 2, 3)).reshape(B, Cout, H, W)
    return out.astype(x.dtype)


def ref_styled_conv(x, style, noise, params, *, kernel_size):
    """Pure-JAX reference mirroring the PyTorch forward (NCHW, f32 HIGHEST)."""
    B, Cin, H, W = x.shape
    D = style.shape[1]
    K = kernel_size
    Cout = params["conv_w"].shape[1]
    p = K // 2
    mod_scale = 1.0 / math.sqrt(D)
    conv_scale = 1.0 / math.sqrt(Cin * K * K)

    s = jnp.dot(style, (params["mod_w"] * mod_scale).T,
                precision=jax.lax.Precision.HIGHEST) + params["mod_b"]       # (B, Cin)
    w = conv_scale * params["conv_w"] * s[:, None, :, None, None]            # (B,Cout,Cin,K,K)
    demod = jax.lax.rsqrt(jnp.sum(w * w, axis=(2, 3, 4)) + 1e-8)
    w = w * demod[:, :, None, None, None]
    w = w.reshape(B * Cout, Cin, K, K)
    xin = x.reshape(1, B * Cin, H, W)
    out = jax.lax.conv_general_dilated(
        xin, w, window_strides=(1, 1), padding=[(p, p), (p, p)],
        dimension_numbers=("NCHW", "OIHW", "NCHW"),
        feature_group_count=B, precision=jax.lax.Precision.HIGHEST)
    out = out.reshape(B, Cout, H, W)
    out = out + params["noise_w"][0] * noise
    out = out + params["act_b"][None, :, None, None]
    out = jnp.where(out >= 0, out, 0.2 * out) * math.sqrt(2.0)
    return out


if __name__ == "__main__":
    B, Cin, Cout, K, D, H, W = 2, 4, 8, 3, 32, 16, 16

    key = jax.random.PRNGKey(0)
    ks = jax.random.split(key, 6)
    x = jax.random.normal(ks[0], (B, Cin, H, W), jnp.float32)
    style = jax.random.normal(ks[1], (B, D), jnp.float32)
    # noise passed explicitly (the module would sample it when noise=None)
    noise = jax.random.normal(ks[2], (B, 1, H, W), jnp.float32)

    params = dict(
        conv_w=jax.random.normal(ks[3], (1, Cout, Cin, K, K), jnp.float32),  # ModulatedConv2d.weight
        mod_w=jax.random.normal(ks[4], (Cin, D), jnp.float32),               # EqualLinear.weight
        mod_b=jnp.ones((Cin,), jnp.float32),                                 # EqualLinear.bias (bias_init=1)
        noise_w=jnp.array([0.05], jnp.float32),                              # NoiseInjection.weight
        act_b=0.1 * jax.random.normal(ks[5], (Cout,), jnp.float32),          # FusedLeakyReLU.bias
    )

    # row_tile=8 -> grid (B, 2): exercises spatial tiling + aligned tap slices.
    out = styled_conv(x, style, noise, params, kernel_size=K, row_tile=8)
    out = jax.block_until_ready(out)
    assert out.shape == (B, Cout, H, W)

    ref = ref_styled_conv(x, style, noise, params, kernel_size=K)
    max_err = float(jnp.max(jnp.abs(out - ref)))
    mean_err = float(jnp.mean(jnp.abs(out - ref)))
    # bf16 conv operands + bf16 output (f32 accumulate) -> bf16-sized tolerance.
    if not (max_err < 1.5e-1 and mean_err < 1.5e-2):
        raise SystemExit(f"mismatch vs reference: max {max_err} mean {mean_err}")
    print("KERNEL_OK")
</pallas_src>

<mosaic_0001>
module attributes {stable_mosaic.version = 11 : i64} {
  func.func @_styled_conv_kernel(%arg0: i32, %arg1: i32, %arg2: memref<1x3x12x8xbf16, #tpu.memory_space<vmem>>, %arg3: memref<1x8xf32, #tpu.memory_space<vmem>>, %arg4: memref<1x288x12xbf16, #tpu.memory_space<vmem>>, %arg5: memref<1x1x128x1xbf16, #tpu.memory_space<vmem>>, %arg6: memref<1x1x128x8xbf16, #tpu.memory_space<vmem>>) attributes {dimension_semantics = [#tpu.dimension_semantics<parallel>, #tpu.dimension_semantics<parallel>], iteration_bounds = array<i64: 2, 2>, scalar_prefetch = 0 : i64, scratch_operands = 0 : i64, tpu.core_type = #tpu.core_type<tc>, window_params = [{transform_indices = @transform_0, window_bounds = array<i64: 1, 3, 12, 8>}, {pipeline_mode = #tpu.pipeline_mode<synchronous>, transform_indices = @transform_1, window_bounds = array<i64: 1, 8>}, {transform_indices = @transform_2, window_bounds = array<i64: 1, 288, 12>}, {transform_indices = @transform_3, window_bounds = array<i64: 1, 1, 128, 1>}, {transform_indices = @transform_4, window_bounds = array<i64: 1, 1, 128, 8>}]} {
    %c8_i32 = arith.constant 8 : i32
    %0 = arith.muli %arg1, %c8_i32 : i32
    %cst = arith.constant 0.000000e+00 : f32
    %1 = vector.broadcast %cst : f32 to vector<128x8xf32>
    %c0_i32 = arith.constant 0 : i32
    %2 = arith.addi %0, %c0_i32 : i32
    %c16_i32 = arith.constant 16 : i32
    %3 = arith.muli %2, %c16_i32 : i32
    %4 = tpu.assume_multiple %3, 8 : i32
    %c0 = arith.constant 0 : index
    %5 = arith.index_cast %4 : i32 to index
    %c0_0 = arith.constant 0 : index
    %6 = vector.load %arg4[%c0, %5, %c0_0] : memref<1x288x12xbf16, #tpu.memory_space<vmem>>, vector<1x128x12xbf16>
    %7 = vector.shape_cast %6 : vector<1x128x12xbf16> to vector<128x12xbf16>
    %c0_1 = arith.constant 0 : index
    %c0_2 = arith.constant 0 : index
    %c0_3 = arith.constant 0 : index
    %c0_4 = arith.constant 0 : index
    %8 = vector.load %arg2[%c0_1, %c0_2, %c0_3, %c0_4] : memref<1x3x12x8xbf16, #tpu.memory_space<vmem>>, vector<1x1x12x8xbf16>
    %9 = vector.shape_cast %8 : vector<1x1x12x8xbf16> to vector<12x8xbf16>
    %cst_5 = arith.constant dense<0.000000e+00> : vector<128x8xf32>
    %10 = tpu.matmul %7, %9, %cst_5 {dimension_numbers = #tpu.dot_dimension_numbers<[1], [0], [0], [1], [0, 0, 1, 1], [], []>} : vector<128x12xbf16>, vector<12x8xbf16>, vector<128x8xf32> -> vector<128x8xf32>
    %11 = arith.addf %1, %10 : vector<128x8xf32>
    %c1_i32 = arith.constant 1 : i32
    %12 = arith.addi %0, %c1_i32 : i32
    %c16_i32_6 = arith.constant 16 : i32
    %13 = arith.muli %12, %c16_i32_6 : i32
    %14 = tpu.assume_multiple %13, 8 : i32
    %c0_7 = arith.constant 0 : index
    %15 = arith.index_cast %14 : i32 to index
    %c0_8 = arith.constant 0 : index
    %16 = vector.load %arg4[%c0_7, %15, %c0_8] : memref<1x288x12xbf16, #tpu.memory_space<vmem>>, vector<1x128x12xbf16>
    %17 = vector.shape_cast %16 : vector<1x128x12xbf16> to vector<128x12xbf16>
    %c0_9 = arith.constant 0 : index
    %c1 = arith.constant 1 : index
    %c0_10 = arith.constant 0 : index
    %c0_11 = arith.constant 0 : index
    %18 = vector.load %arg2[%c0_9, %c1, %c0_10, %c0_11] : memref<1x3x12x8xbf16, #tpu.memory_space<vmem>>, vector<1x1x12x8xbf16>
    %19 = vector.shape_cast %18 : vector<1x1x12x8xbf16> to vector<12x8xbf16>
    %cst_12 = arith.constant dense<0.000000e+00> : vector<128x8xf32>
    %20 = tpu.matmul %17, %19, %cst_12 {dimension_numbers = #tpu.dot_dimension_numbers<[1], [0], [0], [1], [0, 0, 1, 1], [], []>} : vector<128x12xbf16>, vector<12x8xbf16>, vector<128x8xf32> -> vector<128x8xf32>
    %21 = arith.addf %11, %20 : vector<128x8xf32>
    %c2_i32 = arith.constant 2 : i32
    %22 = arith.addi %0, %c2_i32 : i32
    %c16_i32_13 = arith.constant 16 : i32
    %23 = arith.muli %22, %c16_i32_13 : i32
    %24 = tpu.assume_multiple %23, 8 : i32
    %c0_14 = arith.constant 0 : index
    %25 = arith.index_cast %24 : i32 to index
    %c0_15 = arith.constant 0 : index
    %26 = vector.load %arg4[%c0_14, %25, %c0_15] : memref<1x288x12xbf16, #tpu.memory_space<vmem>>, vector<1x128x12xbf16>
    %27 = vector.shape_cast %26 : vector<1x128x12xbf16> to vector<128x12xbf16>
    %c0_16 = arith.constant 0 : index
    %c2 = arith.constant 2 : index
    %c0_17 = arith.constant 0 : index
    %c0_18 = arith.constant 0 : index
    %28 = vector.load %arg2[%c0_16, %c2, %c0_17, %c0_18] : memref<1x3x12x8xbf16, #tpu.memory_space<vmem>>, vector<1x1x12x8xbf16>
    %29 = vector.shape_cast %28 : vector<1x1x12x8xbf16> to vector<12x8xbf16>
    %cst_19 = arith.constant dense<0.000000e+00> : vector<128x8xf32>
    %30 = tpu.matmul %27, %29, %cst_19 {dimension_numbers = #tpu.dot_dimension_numbers<[1], [0], [0], [1], [0, 0, 1, 1], [], []>} : vector<128x12xbf16>, vector<12x8xbf16>, vector<128x8xf32> -> vector<128x8xf32>
    %31 = arith.addf %21, %30 : vector<128x8xf32>
    %c0_20 = arith.constant 0 : index
    %c0_21 = arith.constant 0 : index
    %c0_22 = arith.constant 0 : index
    %c0_23 = arith.constant 0 : index
    %32 = vector.load %arg5[%c0_20, %c0_21, %c0_22, %c0_23] : memref<1x1x128x1xbf16, #tpu.memory_space<vmem>>, vector<1x1x128x1xbf16>
    %33 = vector.shape_cast %32 : vector<1x1x128x1xbf16> to vector<128x1xbf16>
    %34 = arith.extf %33 : vector<128x1xbf16> to vector<128x1xf32>
    %35 = vector.broadcast %34 : vector<128x1xf32> to vector<128x8xf32>
    %36 = arith.addf %31, %35 : vector<128x8xf32>
    %c0_24 = arith.constant 0 : index
    %c0_25 = arith.constant 0 : index
    %37 = vector.load %arg3[%c0_24, %c0_25] : memref<1x8xf32, #tpu.memory_space<vmem>>, vector<1x8xf32>
    %38 = vector.broadcast %37 : vector<1x8xf32> to vector<128x8xf32>
    %39 = arith.addf %36, %38 : vector<128x8xf32>
    %cst_26 = arith.constant 0.000000e+00 : f32
    %40 = vector.broadcast %cst_26 : f32 to vector<128x8xf32>
    %41 = arith.cmpf oge, %39, %40 : vector<128x8xf32>
    %cst_27 = arith.constant 2.000000e-01 : f32
    %42 = vector.broadcast %cst_27 : f32 to vector<128x8xf32>
    %43 = arith.mulf %42, %39 : vector<128x8xf32>
    %44 = arith.select %41, %39, %43 : vector<128x8xi1>, vector<128x8xf32>
    %cst_28 = arith.constant 1.41421354 : f32
    %45 = vector.broadcast %cst_28 : f32 to vector<128x8xf32>
    %46 = arith.mulf %44, %45 : vector<128x8xf32>
    %47 = arith.truncf %46 : vector<128x8xf32> to vector<128x8xbf16>
    %c0_29 = arith.constant 0 : index
    %c0_30 = arith.constant 0 : index
    %c0_31 = arith.constant 0 : index
    %c0_32 = arith.constant 0 : index
    %48 = vector.load %arg6[%c0_29, %c0_30, %c0_31, %c0_32] : memref<1x1x128x8xbf16, #tpu.memory_space<vmem>>, vector<1x1x128x8xbf16>
    %49 = vector.shape_cast %48 : vector<1x1x128x8xbf16> to vector<128x8xbf16>
    %50 = vector.shape_cast %47 : vector<128x8xbf16> to vector<1x1x128x8xbf16>
    tpu.vector_store %arg6[%c0_29, %c0_30, %c0_31, %c0_32], %50 {strides = array<i32>} : memref<1x1x128x8xbf16, #tpu.memory_space<vmem>>, vector<1x1x128x8xbf16>,
    return
  }
  func.func @transform_0(%arg0: i32, %arg1: i32) -> (i32, i32, i32, i32) {
    %c0_i32 = arith.constant 0 : i32
    %c0_i32_0 = arith.constant 0 : i32
    %c0_i32_1 = arith.constant 0 : i32
    %c0_i32_2 = arith.constant 0 : i32
    return %arg0, %c0_i32, %c0_i32_0, %c0_i32_1 : i32, i32, i32, i32
  }
  func.func @transform_1(%arg0: i32, %arg1: i32) -> (i32, i32) {
    %c0_i32 = arith.constant 0 : i32
    %c0_i32_0 = arith.constant 0 : i32
    %c0_i32_1 = arith.constant 0 : i32
    return %c0_i32, %c0_i32_0 : i32, i32
  }
  func.func @transform_2(%arg0: i32, %arg1: i32) -> (i32, i32, i32) {
    %c0_i32 = arith.constant 0 : i32
    %c0_i32_0 = arith.constant 0 : i32
    %c0_i32_1 = arith.constant 0 : i32
    return %arg0, %c0_i32, %c0_i32_0 : i32, i32, i32
  }
  func.func @transform_3(%arg0: i32, %arg1: i32) -> (i32, i32, i32, i32) {
    %c0_i32 = arith.constant 0 : i32
    %c0_i32_0 = arith.constant 0 : i32
    %c0_i32_1 = arith.constant 0 : i32
    return %arg0, %arg1, %c0_i32, %c0_i32_0 : i32, i32, i32, i32
  }
  func.func @transform_4(%arg0: i32, %arg1: i32) -> (i32, i32, i32, i32) {
    %c0_i32 = arith.constant 0 : i32
    %c0_i32_0 = arith.constant 0 : i32
    %c0_i32_1 = arith.constant 0 : i32
    return %arg0, %arg1, %c0_i32, %c0_i32_0 : i32, i32, i32, i32
  }
}

</mosaic_0001>

<bundles_post_ra>
// kernel: tpu_custom_call.1
= control target key start
LH: loop header
LB: loop body
LE: loop exit
PB: predicated region body
PF: predicated region fallthrough
CT: control target
= control target key end

     0   :  { %s2702_s0 = inlined_call_operand.hbm [shape: bf16[2,3,12,8], index: 0, kind: input, shape index: {}]   ;;  %s2703_s1 = inlined_call_operand.hbm [shape: f32[1,8], index: 1, kind: input, shape index: {}]   ;;  %s2704_s2 = inlined_call_operand.hbm [shape: bf16[2,288,12], index: 2, kind: input, shape index: {}]   ;;  %s2705_s3 = inlined_call_operand.hbm [shape: bf16[2,2,128,1], index: 3, kind: input, shape index: {}]   ;;  %s2706_s4 = inlined_call_operand.hbm [shape: bf16[2,2,128,8], index: 4, kind: output, shape index: {}]  }
   0x1   :  { %2726 = sst [smem:[#allocation22_spill]] %s2702_s0 }
   0x2   :  { %2727 = sst [smem:[#allocation23_spill]] %s2703_s1 }
   0x3   :  { %2728 = sst [smem:[#allocation24_spill]] %s2704_s2 }
   0x4   :  { %2729 = sst [smem:[#allocation25_spill]] %s2706_s4 }
   0x5   :  { %9 = vsyncpa [#allocation3], 0 }
   0x6   :  { %11 = vsyncpa [#allocation3 + $0x1], 0 }
   0x7   :  { %12 = vsyncpa [#allocation6], 0 }
   0x8   :  { %13 = vsyncpa [#allocation4], 0 }
   0x9   :  { %15 = vsyncpa [#allocation4 + $0x1], 0  ;;  %s2167_s15 = smov 0   ;;  %s2169_s16 = smov 0  }
   0xa   :  { %s2171_s17 = smov 0   ;;  %s2173_s18 = smov 0  }
   0xb   :  { %s2175_s19 = smov 0   ;;  %s2177_s20 = smov 0  }
   0xc   :  { %s2179_s21 = smov 0   ;;  %s2181_s22 = smov 0  }
   0xd   :  { %s2183_s23 = smov 0   ;;  %s2185_s24 = smov 0  }
   0xe   :  { %s2187_s25 = smov 0  }
   0xf LB: > { %2730 = sst [smem:[#allocation15_spill]] %s2090_s15  ;;  %p47_p0 = scmp.ne.s32.totalorder %s2110_s20, %s2106_s19  ;;  %s2130_s25 = sphi %s2187_s25, %s2780_s25   ;;  %s2126_s24 = sphi %s2185_s24, %s2779_s24   ;;  %s2122_s23 = sphi %s2183_s23, %s2771_s23   ;;  %s2118_s22 = sphi %s2181_s22, %s2778_s22   ;;  %s2114_s21 = sphi %s2179_s21, %s2770_s21   ;;  %s2110_s20 = sphi %s2177_s20, %s2777_s20   ;;  %s2106_s19 = sphi %s2175_s19, %s2776_s19   ;;  %s2102_s18 = sphi %s2173_s18, %s2775_s18   ;;  %s2098_s17 = sphi %s2171_s17, %s2774_s17   ;;  %s2094_s16 = sphi %s2169_s16, %s2773_s16   ;;  %s2090_s15 = sphi %s2167_s15, %s2772_s15  }
  0x10   : > { %2731 = sst [smem:[#allocation16_spill]] %s2118_s22  ;;  %p48_p1 = scmp.eq.s32.totalorder %s2130_s25, 0 }
  0x11   : > { %2732 = sst [smem:[#allocation17_spill]] %s2122_s23  ;;  %p2707_p2 = scmp.lt.s32.totalorder %s2130_s25, 4 }
  0x12   : > { %2733 = sst [smem:[#allocation18_spill]] %s2130_s25  ;;  %s191_s27 = sand.u32 1, %s2130_s25  }
  0x13   : > { %p49_p3 = por %p48_p1, %p47_p0  ;;  %s193_s28 = sand.u32 1, %s2110_s20  }
  0x14   : > { %s1660_s29 = smul.u32 384, %s2126_s24  ;;  %s2735_s0 = sld [smem:[#allocation22_spill]] }
  0x15   : > { %s1659_s30 = smul.u32 24, %s193_s28  ;;  %p2234_p4 = pnand %p2707_p2, %p49_p3 }
  0x16   : > { %s2245_s11 = smul.u32 144, %s193_s28  ;;  %s2247_s12 = scalar_lea.sflag [#allocation3], %s191_s27 }
  0x17   : > { %s195_s9 = scalar_lea.vmem [#allocation2], %s1659_s30  ;;  %p1880_p6 = pneg %p2234_p4 }
  0x18   : > { %s202_s10 = sshll.u32 %s195_s9, 4  ;;  %s2243_s10 = int_to_ptr.vmem [resolvable:$true] %s202_s10 }
  0x1a   : > { %s2241_s8 = scalar_lea.hbm %s2735_s0, %s1660_s29  ;;  %s1883_s6 = scalar_lea.hbm %s2735_s0, 768 }
  0x1b   : > { %s1878_s13 = scalar_lea.hbm %s2241_s8, 384  ;;  %p1884_p9 = scmp.lt.u32.totalorder %s2241_s8, %s2735_s0 }
  0x1c   : > { %p1879_p5 = scmp.ne.s32.totalorder %s2241_s8, %s1878_s13  ;;  %p1885_p10 = scmp.lt.u32.totalorder %s1883_s6, %s1878_s13 }
  0x1d   : > { %p1887_p12 = scmp.lt.u32.totalorder %s1878_s13, %s2241_s8 }
  0x1e   : > { %p1881_p7 = pnand %p1880_p6, %p1879_p5  ;;  %p1886_p11 = por %p1885_p10, %p1884_p9 }
  0x20   : > { %p1882_p8 = pneg %p1881_p7  ;;  %p1888_p13 = por %p1887_p12, %p1886_p11 }
  0x22   : > { %p1889_p0 = pnand %p1888_p13, %p1882_p8 }
  0x24   : > { %1892 = shalt.err (!%p1889_p0)
}
  0x25   : > { %s1893_s27 = scalar_lea.vmem %s2243_s10, 384  ;;  %s2132_s28 = smov [#allocation2]  }
  0x26   : > { %p1894_p3 = scmp.ne.s32.totalorder %s2243_s10, %s1893_s27  ;;  %s1898_s9 = sshll.u32 %s2132_s28, 4  ;;  %s1899_s9 = int_to_ptr.vmem [resolvable:$false] %s1898_s9 }
  0x27   : > { %s1900_s14 = scalar_lea.vmem %s1899_s9, 768  ;;  %p1901_p2 = scmp.lt.s32.totalorder %s2243_s10, %s1899_s9 }
  0x28   : > { %p1896_p5 = pnand %p1894_p3, %p1880_p6  ;;  %p1902_p9 = scmp.lt.s32.totalorder %s1900_s14, %s1893_s27 }
  0x2a   : > { %p1897_p7 = pneg %p1896_p5  ;;  %p1903_p10 = por %p1902_p9, %p1901_p2 }
  0x2c   : > { %p1904_p11 = pnand %p1903_p10, %p1897_p7 }
  0x2e   : > { %1907 = shalt.err (!%p1904_p11)
}
  0x2f   : > { %s2709_s13 = smov 64   ;;  %s2710_s29 = smov 4  }
  0x30   : > { %1684 = dma.hbm_to_vmem [thread:$0]  (!%p2234_p4), %s2241_s8, 384, %s2243_s10, %s2247_s12, %s2709_s13, %s2709_s13, %s2710_s29  }
  0x31   : > { %s1662_s6 = smul.u32 2304, %s2126_s24  ;;  %s216_s30 = scalar_lea.vmem [#allocation7], %s2245_s11 }
  0x32   : > { %s223_s7 = sshll.u32 %s216_s30, 4  ;;  %s2736_s2 = sld [smem:[#allocation24_spill]]  ;;  %s2285_s7 = int_to_ptr.vmem [resolvable:$true] %s223_s7 }
  0x38   : > { %s2283_s9 = scalar_lea.hbm %s2736_s2, %s1662_s6  ;;  %s1913_s11 = scalar_lea.hbm %s2736_s2, 4608 }
  0x39   : > { %s1908_s14 = scalar_lea.hbm %s2283_s9, 2304  ;;  %p1914_p13 = scmp.lt.u32.totalorder %s2283_s9, %s2736_s2 }
  0x3a   : > { %p1909_p2 = scmp.ne.s32.totalorder %s2283_s9, %s1908_s14  ;;  %p1915_p0 = scmp.lt.u32.totalorder %s1913_s11, %s1908_s14 }
  0x3b   : > { %p1917_p5 = scmp.lt.u32.totalorder %s1908_s14, %s2283_s9 }
  0x3c   : > { %p1911_p8 = pnand %p1909_p2, %p1880_p6  ;;  %p1916_p3 = por %p1915_p0, %p1914_p13 }
  0x3e   : > { %p1912_p12 = pneg %p1911_p8  ;;  %p1918_p7 = por %p1917_p5, %p1916_p3 }
  0x40   : > { %p1919_p9 = pnand %p1918_p7, %p1912_p12 }
  0x42   : > { %1922 = shalt.err (!%p1919_p9)
}
  0x43   : > { %s1923_s6 = scalar_lea.vmem %s2285_s7, 2304  ;;  %s2135_s28 = smov [#allocation7]  }
  0x44   : > { %p1924_p10 = scmp.ne.s32.totalorder %s2285_s7, %s1923_s6  ;;  %s1928_s8 = sshll.u32 %s2135_s28, 4  ;;  %s1929_s8 = int_to_ptr.vmem [resolvable:$false] %s1928_s8 }
  0x45   : > { %s1930_s10 = scalar_lea.vmem %s1929_s8, 4608  ;;  %p1931_p8 = scmp.lt.s32.totalorder %s2285_s7, %s1929_s8 }
  0x46   : > { %p1926_p11 = pnand %p1924_p10, %p1880_p6  ;;  %p1932_p13 = scmp.lt.s32.totalorder %s1930_s10, %s1923_s6 }
  0x48   : > { %p1927_p2 = pneg %p1926_p11  ;;  %p1933_p0 = por %p1932_p13, %p1931_p8 }
  0x4a   : > { %p1934_p3 = pnand %p1933_p0, %p1927_p2 }
  0x4c   : > { %1937 = shalt.err (!%p1934_p3)
}
  0x4d   : > { %1687 = dma.hbm_to_vmem [thread:$0]  (!%p2234_p4), %s2283_s9, 2304, %s2285_s7, %s2247_s12, %s2709_s13, %s2709_s13, %s2710_s29  }
  0x4e   : > { %s2315_s5 = sadd.s32 4294967295, %s2130_s25   ;;  %s1380_s14 = sadd.s32 4294967294, %s2130_s25  }
  0x4f   : > { %p53_p6 = scmp.ne.s32.totalorder %s2106_s19, %s2102_s18  ;;  %p2708_p12 = scmp.eq.s32.totalorder %s2315_s5, 0 }
  0x50   : > { %p122_p5 = scmp.ne.s32.totalorder %s2098_s17, %s2094_s16  ;;  %p128_p7 = scmp.ne.s32.totalorder %s2094_s16, %s2090_s15 }
  0x51   : > { %p2328_p9 = por %p2708_p12, %p53_p6  ;;  %p154_p4 = scmp.eq.s32.totalorder %s2315_s5, 3 }
  0x52   : > { %p124_p10 = por %p122_p5, %p48_p1  ;;  %p2337_p11 = por %p128_p7, %p2708_p12 }
  0x53   : > { %s2737_s30 = scalar_select %p2328_p9, 1, 0 }
  0x54   : > { %s2738_s7 = scalar_select %p2337_p11, 1, 0 }
  0x55   : > { %p2341_p2 = por %p154_p4, %p122_p5  ;;  %p160_p8 = scmp.eq.s32.totalorder %s1380_s14, 3 }
  0x56   : > { %p1381_p13 = scmp.ge.s32.totalorder %s2130_s25, 1  ;;  %p167_p0 = scmp.lt.s32.totalorder %s2130_s25, 5 }
  0x57   : > { %s2739_s18 = scalar_select %p2341_p2, 1, 0 }
  0x58   : > { %p2347_p3 = por %p160_p8, %p128_p7  ;;  %p2351_p6 = pnand %p1381_p13, %p167_p0 }
  0x59   : > { %2740 = sst [smem:[#allocation19_spill]] %s2739_s18  ;;  %s2136_s6 = smov [#allocation5]  }
  0x5a   : > { %s2741_s9 = scalar_select %p2347_p3, 1, 0 }
  0x5b   : > { %s2743_s27 = scalar_select %p2351_p6, 1, 0 }
  0x5c   : > { %2742 = sst [smem:[#allocation20_spill]] %s2741_s9  ;;  %s180_s28 = sshll.u32 %s2136_s6, 4  ;;  %s181_s28 = int_to_ptr.vmem [resolvable:$true] %s180_s28 }
  0x5d   : > { %p2744_p1 = scmp.lt.s32.totalorder %s2130_s25, 4  ;;  %p1677_p5 = pneg %p2351_p6 }
  0x5e   : > { %p2746_p4 = scmp.eq.s32.totalorder %s2315_s5, 0  ;;  %s30_s14 = sadd.s32 1, %s2122_s23 }
  0x5f   : > { %p2357_p12 = pnand %p2744_p1, %p124_p10  ;;  %s33_s13 = sadd.s32 1, %s2126_s24 }
  0x60   : > { %p2365_p7 = pnand %p1677_p5, %p2746_p4  ;;  %p2371_p8 = scmp.ge.s32.totalorder %s30_s14, 2 }
  0x61   : > { %s2745_s8 = scalar_select %p2357_p12, 1, 0 }
  0x62   : > { %s2748_s29 = scalar_select %p2371_p8, 1, 0 }
  0x63   : > { %s2749_s1 = sld [smem:[#allocation23_spill]]  ;;  %p1940_p13 = pneg %p2365_p7 }
  0x69   : > { %s1938_s26 = scalar_lea.hbm %s2749_s1, 16 }
  0x6a   : > { %p1939_p10 = scmp.ne.s32.totalorder %s2749_s1, %s1938_s26  ;;  %p1945_p5 = scmp.lt.u32.totalorder %s1938_s26, %s2749_s1 }
  0x6c   : > { %p1941_p0 = pnand %p1940_p13, %p1939_p10 }
  0x6e   : > { %p1942_p1 = pneg %p1941_p0 }
  0x70   : > { %p1947_p4 = pnand %p1945_p5, %p1942_p1 }
  0x72   : > { %1950 = shalt.err (!%p1947_p4)
}
  0x73   : > { %s1951_s25 = scalar_lea.vmem %s181_s28, 16  ;;  %s1958_s11 = scalar_lea.vmem %s181_s28, 32 }
  0x74   : > { %p1952_p3 = scmp.ne.s32.totalorder %s181_s28, %s1951_s25  ;;  %p1959_p9 = scmp.lt.s32.totalorder %s181_s28, %s181_s28 }
  0x75   : > { %p1960_p6 = scmp.lt.s32.totalorder %s1958_s11, %s1951_s25 }
  0x76   : > { %p1954_p2 = pnand %p1952_p3, %p1940_p13 }
  0x77   : > { %p1961_p12 = por %p1960_p6, %p1959_p9 }
  0x78   : > { %p1955_p11 = pneg %p1954_p2 }
  0x7a   : > { %p1962_p8 = pnand %p1961_p12, %p1955_p11 }
  0x7c   : > { %1965 = shalt.err (!%p1962_p8)
}
  0x7d   : > { %1680 = dma.hbm_to_vmem [thread:$0]  (!%p2365_p7), %s2749_s1, 16, %s181_s28, [#allocation6]  }
  0x7e   : > { %p2750_p2 = scmp.ne.s32.totalorder %s2748_s29, 0  ;;  %s235_s25 = sand.u32 1, %s2098_s17  }
  0x7f   : > { %s1386_s26 = sshll.u32 %s235_s25, 6  ;;  %s1387_s9 = sshll.u32 %s2122_s23, 4 }
  0x80   : > { %s2782_s14 = smov (%p2750_p2, %s30_s14), 0  ;;  %s2784_s13 = smov (!%p2750_p2, %s33_s13), %s2126_s24 }
  0x81   : > { %2751 = sst [smem:[#allocation21_spill]] %s2782_s14  ;;  %s111_s15 = ssub.s32 %s2122_s23, %s2782_s14 }
  0x82   : > { %p35_p12 = scmp.ge.s32.totalorder %s2784_s13, 2  ;;  %s1388_s28 = sshll.u32 %s2126_s24, 5 }
  0x83   : > { %s237_s10 = scalar_lea.vmem [#allocation8], %s1386_s26  ;;  %s243_s11 = sadd.s32 %s1388_s28, %s1387_s9 }
  0x84   : > { %s2786_s13 = smov (%p35_p12, %s2784_s13), 0  ;;  %s246_s6 = sshll.u32 %s237_s10, 4  ;;  %s2422_s6 = int_to_ptr.vmem [resolvable:$true] %s246_s6 }
  0x85   : > { %s37_s29 = ssub.s32 %s2126_s24, %s2786_s13  ;;  %s1389_s2 = sshll.u32 %s243_s11, 6 }
  0x86   : > { %p38_p9 = scmp.eq.s32.totalorder %s37_s29, 0  ;;  %s112_s0 = sor.u32 %s111_s15, %s37_s29 }
  0x87   : > { %p113_p11 = scmp.eq.s32.totalorder %s112_s0, 0  ;;  %s2752_s1 = sadd.s32 1, %s2110_s20 }
  0x88   : > { %s2410_s14 = scalar_select %p38_p9, %s2110_s20, %s2752_s1  }
  0x89   : > { %s2753_s4 = sadd.s32 1, %s2098_s17  ;;  %s2420_s22 = scalar_lea.hbm %s2705_s3, %s1389_s2 }
  0x8a   : > { %s2415_s25 = scalar_select %p113_p11, %s2098_s17, %s2753_s4  }
  0x8b   : > { %s1966_s15 = scalar_lea.hbm %s2420_s22, 1024  ;;  %p2754_p6 = scmp.ne.s32.totalorder %s2745_s8, 0 }
  0x8c   : > { %p1967_p3 = scmp.ne.s32.totalorder %s2420_s22, %s1966_s15  ;;  %s1971_s23 = scalar_lea.hbm %s2705_s3, 4096 }
  0x8d   : > { %p1968_p7 = pneg %p2754_p6  ;;  %p1972_p13 = scmp.lt.u32.totalorder %s2420_s22, %s2705_s3 }
  0x8e   : > { %p1973_p0 = scmp.lt.u32.totalorder %s1971_s23, %s1966_s15  ;;  %p1975_p5 = scmp.lt.u32.totalorder %s1966_s15, %s2420_s22 }
  0x8f   : > { %p1969_p8 = pnand %p1968_p7, %p1967_p3 }
  0x90   : > { %p1974_p1 = por %p1973_p0, %p1972_p13 }
  0x91   : > { %p1970_p10 = pneg %p1969_p8 }
  0x92   : > { %p1976_p4 = por %p1975_p5, %p1974_p1 }
  0x94   : > { %p1977_p2 = pnand %p1976_p4, %p1970_p10 }
  0x96   : > { %1980 = shalt.err (!%p1977_p2)
}
  0x97   : > { %s1981_s9 = scalar_lea.vmem %s2422_s6, 1024  ;;  %s2137_s28 = smov [#allocation8]  }
  0x98   : > { %p1982_p12 = scmp.ne.s32.totalorder %s2422_s6, %s1981_s9  ;;  %s1986_s10 = sshll.u32 %s2137_s28, 4  ;;  %s1987_s10 = int_to_ptr.vmem [resolvable:$false] %s1986_s10 }
  0x99   : > { %s1988_s29 = scalar_lea.vmem %s1987_s10, 2048  ;;  %p1989_p3 = scmp.lt.s32.totalorder %s2422_s6, %s1987_s10 }
  0x9a   : > { %p1984_p9 = pnand %p1982_p12, %p1968_p7  ;;  %p1990_p8 = scmp.lt.s32.totalorder %s1988_s29, %s1981_s9 }
  0x9c   : > { %p1985_p11 = pneg %p1984_p9  ;;  %p1991_p13 = por %p1990_p8, %p1989_p3 }
  0x9e   : > { %p1992_p0 = pnand %p1991_p13, %p1985_p11 }
  0xa0   : > { %1995 = shalt.err (!%p1992_p0)
}
  0xa1   : > { %s2755_s11 = smov 4   ;;  %s2756_s0 = smov 64  }
  0xa2   : > { %1690 = dma.hbm_to_vmem [thread:$0]  (!%p2754_p6), %s2420_s22, 1024, %s2422_s6, %s2247_s12, %s2756_s0, %s2756_s0, %s2755_s11  }
  0xa3   : > { %p2757_p7 = scmp.ne.s32.totalorder %s2743_s27, 0 }
  0xa4   : > { %s260_s2 = sand.u32 (!%p2757_p7), 1, %s2315_s5   ;;  %s262_s15 = sand.u32 (!%p2757_p7), 1, %s2106_s19  }
  0xa5   : > { %258 = sbr.rel (%p2757_p7) target bundleno = 479 (0x1df), region = 36  ;;  %s261_s4 = scalar_lea.sflag (!%p2757_p7), [#allocation3], %s260_s2 }
  0xa6   : > { %s1663_s1 = smul.u32 (!%p2757_p7), 24, %s262_s15  ;;  %p2758_p10 = scmp.ne.s32.totalorder (!%p2757_p7), %s2737_s30, 0 }
  0xa8   : > { %s2457_s23 = scalar_lea.vmem (!%p2757_p7), [#allocation2], %s1663_s1 }
  0xac   : > { %2069 = dma.done.wait (%p2758_p10), %s261_s4, 384  }
  0xad   : > { %2071 = vsyncadd (%p2758_p10), %s261_s4, 4294966912  ;;  %p2759_p1 = scmp.eq.s32.totalorder %s2315_s5, 0 }
  0xaf   : > { %2073 = dma.done.wait (%p2759_p1), [#allocation6], 16   ;;  %p2760_p6 = pmov %p2759_p1 }
  0xb0   : > { %s1664_s22 = smul.u32 144, %s262_s15 }
  0xb1   : > { %2075 = vsyncadd (%p2760_p6), [#allocation6], 4294967280 }
  0xb2   : > { %s2467_s12 = scalar_lea.vmem [#allocation7], %s1664_s22 }
  0xb3   : > { %2077 = dma.done.wait (%p2758_p10), %s261_s4, 2304  }
  0xb4   : > { %2079 = vsyncadd (%p2758_p10), %s261_s4, 4294964992  ;;  %s284_s27 = sand.u32 1, %s2094_s16   ;;  %p2761_p5 = scmp.ne.s32.totalorder %s2738_s7, 0 }
  0xb5   : > { %s2476_s8 = sshll.u32 %s284_s27, 6 }
  0xb6   : > { %s2479_s6 = scalar_lea.vmem [#allocation8], %s2476_s8 }
  0xb7   : > { %2081 = dma.done.wait (%p2761_p5), %s261_s4, 1024  }
  0xb8   : > { %2083 = vsyncadd (%p2761_p5), %s261_s4, 4294966272  ;;  %s1395_s5 = sshll.u32 %s2114_s21, 7  ;;  %v2138_v0 = vmov 0   ;;  %vm441_vm0 = vcmask 1045504   ;;  %vm416_vm1 = vcmask 97280   ;;  %v1500_v24 = vld [vmem:[%s2479_s6] sm:$0xff]  }
  0xb9   : > { %s1480_s30 = sadd.s32 16, %s1395_s5  ;;  %1793 = vset.pattern.permute.xlu0 %v2138_v0  ;;  %1804 = vset.pattern.permute.xlu1 %v2138_v0  ;;  %s1482_s9 = sadd.s32 32, %s1395_s5  ;;  %v1835_v1 = vld [vmem:[%s2457_s23 + $0x8] sm:$0x3f]   ;;  %v1836_v2 = vld [vmem:[%s2457_s23] sm:$0x3f]   ;;  %v1501_v28 = vunpack.c.l.bf16 %v1500_v24  ;;  %v1502_v29 = vunpack.c.h.bf16 %v1500_v24 }
  0xba   : > { %s348_s18 = sshra.s32 %s1480_s30, 3  ;;  %s324_s28 = sshra.s32 %s1395_s5, 3  ;;  %1655 = vmatprep.subr.msk.bf16.mxu1 %vm441_vm0, %v1835_v1  ;;  %v443_v3 = vsel %vm441_vm0, %v1835_v1, 0  ;;  %1656 = vmatprep.subr.msk.bf16.mxu0 %vm441_vm0, %v1836_v2  ;;  %v612_v5 = vsel %vm441_vm0, %v1836_v2, 0  ;;  %v1841_v9 = vld [vmem:[%s2457_s23 + $0x10] sm:$0x3f]  }
  0xbb   : > { %s1398_s26 = sshll.u32 %s348_s18, 2  ;;  %s1396_s10 = sshll.u32 %s324_s28, 2  ;;  %1568 = vmatpush3.bf16.msra.mxu1 %v443_v3  ;;  %1586 = vmatpush3.bf16.msra.mxu0 %v612_v5  ;;  %v806_v11 = vsel %vm441_vm0, %v1841_v9, 0  ;;  %v1533_v25 = vld [vmem:[%s2479_s6 + $0x8] sm:$0xff]   ;;  %v1534_v26 = vld [vmem:[%s2479_s6 + $0x10] sm:$0xff]   ;;  %v1535_v32 = vld [vmem:[%s2479_s6 + $0x18] sm:$0xff]   ;;  %v1794_v38 = vpack.i.bf16 %v1502_v29, %v1501_v28 }
  0xbc   : > { %s2487_s29 = scalar_lea.vmem %s2467_s12, %s1398_s26 [#allocation7]  ;;  %s2489_s7 = sshra.s32 %s1482_s9, 3  ;;  %1657 = vmatprep.subr.msk.bf16.mxu1 %vm441_vm0, %v1836_v2  ;;  %1658 = vmatprep.subr.msk.bf16.mxu0 %vm441_vm0, %v1841_v9  ;;  %v1505_v30 = vunpack.c.l.bf16 %v1533_v25  ;;  %v1506_v31 = vunpack.c.h.bf16 %v1533_v25  ;;  %v1509_v33 = vunpack.c.l.bf16 %v1534_v26  ;;  %v1510_v34 = vunpack.c.h.bf16 %v1534_v26  ;;  %v1536_v37 = vld [vmem:[%s2479_s6 + $0x20] sm:$0xff]   ;;  %v1537_v39 = vld [vmem:[%s2479_s6 + $0x28] sm:$0xff]   ;;  %v1538_v47 = vld [vmem:[%s2479_s6 + $0x30] sm:$0xff]  }
  0xbd   : > { %s2493_s11 = scalar_lea.vmem %s2467_s12, %s1396_s10 [#allocation7]  ;;  %v1837_v4 = vld [vmem:[%s2487_s29] sm:$0xff]   ;;  %v1839_v7 = vld [vmem:[%s2487_s29 + $0x8] sm:$0xff]   ;;  %s1436_s0 = sshll.u32 %s2489_s7, 2  ;;  %v1842_v10 = vld [vmem:[%s2487_s29 + $0x10] sm:$0xff]   ;;  %v1513_v35 = vunpack.c.l.bf16 %v1535_v32  ;;  %v1514_v36 = vunpack.c.h.bf16 %v1535_v32  ;;  %1795 = vperm.xlu0 %1793, %v1794_v38   ;;  %v1517_v42 = vunpack.c.l.bf16 %v1536_v37  ;;  %v1518_v43 = vunpack.c.h.bf16 %v1536_v37 }
  0xbe   : > { %v1838_v6 = vld [vmem:[%s2493_s11] sm:$0xff]   ;;  %1569 = vmatprep.mubr.msk.bf16.mxu1 %vm416_vm1, %v1837_v4  ;;  %v1840_v8 = vld [vmem:[%s2493_s11 + $0x8] sm:$0xff]   ;;  %v1843_v12 = vld [vmem:[%s2493_s11 + $0x10] sm:$0xff]   ;;  %s2518_s2 = scalar_lea.vmem %s2467_s12, %s1436_s0 [#allocation7]  ;;  %v1805_v40 = vpack.i.bf16 %v1510_v34, %v1509_v33  ;;  %v1799_v41 = vpack.i.bf16 %v1506_v31, %v1505_v30  ;;  %v1521_v45 = vunpack.c.l.bf16 %v1537_v39  ;;  %v1522_v46 = vunpack.c.h.bf16 %v1537_v39  ;;  %s2577_s15 = scalar_lea.vmem [#allocation9], %s2476_s8 }
  0xbf   : > { %1587 = vmatprep.mubr.msk.bf16.mxu0 %vm416_vm1, %v1838_v6  ;;  %1570 = vmatmul.mubr.msk.bf16.vlgmr.msra.gmra.mrb[0].mxu1 %vm416_vm1, %v1839_v7  ;;  %v1844_v13 = vld [vmem:[%s2487_s29 + $0x18] sm:$0xff]   ;;  %v1846_v15 = vld [vmem:[%s2487_s29 + $0x20] sm:$0xff]   ;;  %v1848_v17 = vld [vmem:[%s2487_s29 + $0x28] sm:$0xff]   ;;  %v1810_v44 = vpack.i.bf16 %v1514_v36, %v1513_v35  ;;  %v1815_v53 = vpack.i.bf16 %v1518_v43, %v1517_v42  ;;  %v1525_v54 = vunpack.c.l.bf16 %v1538_v47  ;;  %v1526_v55 = vunpack.c.h.bf16 %v1538_v47  ;;  %s2762_s1 = sld [smem:[#allocation16_spill]]  ;;  %s1474_s4 = sshll.u32 %s2114_s21, 4 }
  0xc0   : > { %1588 = vmatmul.mubr.msk.bf16.vlgmr.msra.gmra.mrb[0].mxu0 %vm416_vm1, %v1840_v8  ;;  %1622 = vmatpush3.bf16.msra.mxu1 %v612_v5  ;;  %v1845_v14 = vld [vmem:[%s2493_s11 + $0x18] sm:$0xff]   ;;  %v1847_v16 = vld [vmem:[%s2518_s2] sm:$0xff]   ;;  %v1849_v18 = vld [vmem:[%s2518_s2 + $0x8] sm:$0xff]   ;;  %v1820_v56 = vpack.i.bf16 %v1522_v46, %v1521_v45  ;;  %vm1200_vm2 = vcmask 60416   ;;  %s2763_s21 = sld [smem:[#allocation19_spill]]  ;;  %s1233_s8 = sshll.u32 %s2577_s15, 4  ;;  %s2633_s8 = int_to_ptr.vmem [resolvable:$true] %s1233_s8 }
  0xc1   : > { %1604 = vmatpush3.bf16.msra.mxu0 %v806_v11  ;;  %1573 = vmatprep.mubr.msk.bf16.mxu1 %vm416_vm1, %v1842_v10  ;;  %v1850_v19 = vld [vmem:[%s2487_s29 + $0x30] sm:$0xff]   ;;  %v1852_v21 = vld [vmem:[%s2487_s29 + $0x38] sm:$0xff]   ;;  %v1854_v23 = vld [vmem:[%s2493_s11 + $0x20] sm:$0xff]   ;;  %v1825_v59 = vpack.i.bf16 %v1526_v55, %v1525_v54  ;;  %s2764_s30 = sld [smem:[#allocation25_spill]]  ;;  %s2641_s26 = scalar_lea.sflag [#allocation4], %s284_s27 }
  0xc2   : > { %1591 = vmatprep.mubr.msk.bf16.mxu0 %vm416_vm1, %v1843_v12  ;;  %v1851_v20 = vld [vmem:[%s2518_s2 + $0x10] sm:$0xff]   ;;  %v1853_v22 = vld [vmem:[%s2518_s2 + $0x18] sm:$0xff]   ;;  %v1855_v27 = vld [vmem:[%s2518_s2 + $0x20] sm:$0xff]   ;;  %1806 = vperm.xlu1 %1804, %v1805_v40   ;;  %s1996_s9 = scalar_lea.vmem %s2633_s8, 1024  ;;  %s2139_s28 = smov [#allocation9]  }
  0xc3   : > { %v1856_v48 = vld [vmem:[%s2493_s11 + $0x28] sm:$0xff]   ;;  %v1858_v51 = vld [vmem:[%s2493_s11 + $0x30] sm:$0xff]   ;;  %1800 = vperm.xlu0 %1793, %v1799_v41   ;;  %v1860_v61 = vld [vmem:[%s2493_s11 + $0x38] sm:$0xff]   ;;  %p1997_p4 = scmp.ne.s32.totalorder %s2633_s8, %s1996_s9  ;;  %s2000_s10 = sshll.u32 %s2139_s28, 4  ;;  %s2001_s10 = int_to_ptr.vmem [resolvable:$false] %s2000_s10 }
  0xc4   : > { %v1539_v49 = vld [vmem:[%s2479_s6 + $0x38] sm:$0xff]   ;;  %v1861_v62 = vld [vmem:[%s2518_s2 + $0x38] sm:$0xff]   ;;  %s2002_s29 = scalar_lea.vmem %s2001_s10, 2048  ;;  %p2003_p11 = scmp.lt.s32.totalorder %s2633_s8, %s2001_s10 }
  0xc5   : > { %v1857_v50 = vld [vmem:[%s2518_s2 + $0x28] sm:$0xff]   ;;  %v1859_v52 = vld [vmem:[%s2518_s2 + $0x30] sm:$0xff]   ;;  %v1529_v57 = vunpack.c.l.bf16 %v1539_v49  ;;  %v1530_v58 = vunpack.c.h.bf16 %v1539_v49  ;;  %s1475_s23 = sshll.u32 %s2762_s1, 5  ;;  %p2004_p3 = scmp.lt.s32.totalorder %s2002_s29, %s1996_s9 }
  0xc6   : > { %1811 = vperm.xlu1 %1804, %v1810_v44   ;;  %s1230_s22 = sadd.s32 %s1475_s23, %s1474_s4  ;;  %p2765_p2 = scmp.ne.s32.totalorder %s2763_s21, 0 }
  0xc7   : > { %1574 = vmatmul.mubr.msk.bf16.gmra.mrb[4].mxu1 %vm416_vm1, %v1844_v13  ;;  %1816 = vperm.xlu0 %1793, %v1815_v53   ;;  %v1830_v60 = vpack.i.bf16 %v1530_v58, %v1529_v57  ;;  %v2566_v13 = vld [vmem:[#allocation5] ss:$0 sm:$0xff]  ;;  %s1476_s12 = sshll.u32 %s1230_s22, 6  ;;  %p2005_p8 = por %p2004_p3, %p2003_p11 }
  0xc8   : > { %1592 = vmatmul.mubr.msk.bf16.gmra.mrb[4].mxu0 %vm416_vm1, %v1845_v14  ;;  %1577 = vmatprep.mubr.msk.bf16.mxu1 %vm416_vm1, %v1846_v15  ;;  %s2631_s18 = scalar_lea.hbm %s2764_s30, %s1476_s12  ;;  %p1998_p12 = pnand %p1997_p4, %p2765_p2 }
  0xc9   : > { %1605 = vmatprep.mubr.msk.bf16.mxu0 %vm416_vm1, %v1847_v16 }
  0xca   : > { %1821 = vperm.xlu1 %1804, %v1820_v56   ;;  %p1999_p9 = pneg %p1998_p12 }
  0xcb   : > { %1826 = vperm.xlu0 %1793, %v1825_v59  }
  0xcc   : > { %p2006_p13 = pnand %p2005_p8, %p1999_p9 }
  0xce   : > { %1831 = vperm.xlu1 %1804, %v1830_v60  }
  0xcf   : > { %1578 = vmatmul.mubr.msk.bf16.gmra.mrb[8].mxu1 %vm416_vm1, %v1848_v17 }
  0xd0   : > { %1606 = vmatmul.mubr.msk.bf16.vlgmr.msra.gmra.mrb[0].mxu0 %vm416_vm1, %v1849_v18  ;;  %1581 = vmatprep.mubr.msk.bf16.mxu1 %vm416_vm1, %v1850_v19 }
  0xd1   : > { %1609 = vmatprep.mubr.msk.bf16.mxu0 %vm416_vm1, %v1851_v20 }
  0xd7   : > { %1582 = vmatmul.mubr.msk.bf16.gmra.mrb[12].mxu1 %vm416_vm1, %v1852_v21 }
  0xd8   : > { %1610 = vmatmul.mubr.msk.bf16.gmra.mrb[4].mxu0 %vm416_vm1, %v1853_v22  ;;  %1595 = vmatprep.mubr.msk.bf16.mxu1 %vm416_vm1, %v1854_v23 }
  0xd9   : > { %1613 = vmatprep.mubr.msk.bf16.mxu0 %vm416_vm1, %v1855_v27 }
  0xdf   : > { %1596 = vmatmul.mubr.msk.bf16.vlgmr.msra.gmra.mrb[8].mxu1 %vm416_vm1, %v1856_v48 }
  0xe0   : > { %1614 = vmatmul.mubr.msk.bf16.gmra.mrb[8].mxu0 %vm416_vm1, %v1857_v50  ;;  %1599 = vmatprep.mubr.msk.bf16.mxu1 %vm416_vm1, %v1858_v51 }
  0xe1   : > { %1617 = vmatprep.mubr.msk.bf16.mxu0 %vm416_vm1, %v1859_v52 }
  0xe7   : > { %1600 = vmatmul.mubr.msk.bf16.gmra.mrb[12].mxu1 %vm416_vm1, %v1860_v61 }
  0xe8   : > { %1618 = vmatmul.mubr.msk.bf16.gmra.mrb[12].mxu0 %vm416_vm1, %v1861_v62 }
 0x13c   : > { %v1796_v3 = vpop.permute.xlu0 %1795 }
 0x141   : > { %v2564_v9 = vpop.permute.xlu1 %1806 }
 0x142   : > { %v1801_v8 = vpop.permute.xlu0 %1800 }
 0x145   : > { %v1812_v21 = vpop.permute.xlu1 %1811 }
 0x146   : > { %v2571_v28 = vpop.permute.xlu0 %1816 }
 0x149   : > { %v1822_v53 = vpop.permute.xlu1 %1821 }
 0x192   : > { %v1571_v63 = vpop.f32.mrb[0].mxu1 }
 0x193   : > { %v479_v0 = vpop.f32.mrb[1].mxu1 }
 0x194   : > { %v1572_v1 = vpop.f32.mrb[2].mxu1 }
 0x195   : > { %v482_v2 = vpop.f32.mrb[3].mxu1 }
 0x19a   : > { %v1575_v4 = vpop.f32.mrb[4].mxu1 }
 0x19b   : > { %v495_v5 = vpop.f32.mrb[5].mxu1 }
 0x19c   : > { %v1576_v6 = vpop.f32.mrb[6].mxu1 }
 0x19d   : > { %v498_v7 = vpop.f32.mrb[7].mxu1 }
 0x1a3   : > { %v1607_v10 = vpop.f32.mrb[0].mxu0 }
 0x1a4   : > { %v1623_v11 = vadd.f32 %v1607_v10, %v1571_v63  ;;  %v842_v12 = vpop.f32.mrb[1].mxu0  ;;  %v2591_v10 = vpop.permute.xlu0 %1826 }
 0x1a5   : > { %v1624_v14 = vadd.f32 %v842_v12, %v479_v0  ;;  %v1608_v15 = vpop.f32.mrb[2].mxu0 }
 0x1a6   : > { %v1862_v16 = vadd.low.f32.bf16 %v1623_v11, %v1801_v8  ;;  %v1625_v17 = vadd.f32 %v1608_v15, %v1572_v1  ;;  %v845_v18 = vpop.f32.mrb[3].mxu0 }
 0x1a7   : > { %v1863_v19 = vadd.low.f32.bf16 %v1624_v14, %v1796_v3  ;;  %v1626_v20 = vadd.f32 %v845_v18, %v482_v2 }
 0x1a8   : > { %v1058_v22 = vadd.f32 %v1862_v16, %v2566_v13  ;;  %v1864_v23 = vadd.high.f32.bf16 %v1625_v17, %v1801_v8 }
 0x1a9   : > { %v1056_v24 = vadd.f32 %v1863_v19, %v2566_v13  ;;  %v1865_v25 = vadd.high.f32.bf16 %v1626_v20, %v1796_v3 }
 0x1aa   : > { %vm1074_vm3 = vcmp.ge.f32.partialorder %v1058_v22, 0.0  ;;  %v1090_v26 = vmul.f32 0.2, %v1058_v22  ;;  %v1059_v27 = vadd.f32 %v1864_v23, %v2566_v13 }
 0x1ab   : > { %vm1072_vm4 = vcmp.ge.f32.partialorder %v1056_v24, 0.0  ;;  %v1088_v29 = vmul.f32 0.2, %v1056_v24  ;;  %v1057_v30 = vadd.f32 %v1865_v25, %v2566_v13  ;;  %v1611_v31 = vpop.f32.mrb[4].mxu0 }
 0x1ac   : > { %v1106_v32 = vsel %vm1074_vm3, %v1058_v22, %v1090_v26  ;;  %vm1075_vm5 = vcmp.ge.f32.partialorder %v1059_v27, 0.0  ;;  %v1091_v33 = vmul.f32 0.2, %v1059_v27  ;;  %v1627_v34 = vadd.f32 %v1611_v31, %v1575_v4  ;;  %v858_v35 = vpop.f32.mrb[5].mxu0  ;;  %v1832_v26 = vpop.permute.xlu1 %1831 }
 0x1ad   : > { %v1122_v36 = vmul.f32 1.4142135, %v1106_v32  ;;  %v1104_v37 = vsel %vm1072_vm4, %v1056_v24, %v1088_v29  ;;  %vm1073_vm6 = vcmp.ge.f32.partialorder %v1057_v30, 0.0  ;;  %v1089_v38 = vmul.f32 0.2, %v1057_v30  ;;  %v1612_v39 = vpop.f32.mrb[6].mxu0 }
 0x1ae   : > { %v1120_v40 = vmul.f32 1.4142135, %v1104_v37  ;;  %v1107_v41 = vsel %vm1075_vm5, %v1059_v27, %v1091_v33  ;;  %v1866_v42 = vadd.low.f32.bf16 %v1627_v34, %v1812_v21  ;;  %v1628_v43 = vadd.f32 %v858_v35, %v495_v5  ;;  %v861_v44 = vpop.f32.mrb[7].mxu0 }
 0x1af   : > { %v1485_v45 = vpack.c.bf16 %v1122_v36, %v1122_v36  ;;  %v1123_v46 = vmul.f32 1.4142135, %v1107_v41  ;;  %v1105_v47 = vsel %vm1073_vm6, %v1057_v30, %v1089_v38  ;;  %v1629_v48 = vadd.f32 %v1612_v39, %v1576_v6 }
 0x1b0   : > { %v1483_v49 = vpack.c.bf16 %v1120_v40, %v1120_v40  ;;  %v1121_v50 = vmul.f32 1.4142135, %v1105_v47  ;;  %v1062_v51 = vadd.f32 %v1866_v42, %v2566_v13  ;;  %v1867_v52 = vadd.low.f32.bf16 %v1628_v43, %v2564_v9 }
 0x1b1   : > { %1203 = vst.msk [vmem:[%s2577_s15 + $0x8] sm:$0xf] %vm1200_vm2, %v1485_v45  ;;  %v1486_v54 = vpack.c.bf16 %v1123_v46, %v1123_v46  ;;  %v1868_v55 = vadd.high.f32.bf16 %v1629_v48, %v1812_v21  ;;  %v1630_v56 = vadd.f32 %v861_v44, %v498_v7 }
 0x1b2   : > { %1201 = vst.msk [vmem:[%s2577_s15] sm:$0xf] %vm1200_vm2, %v1483_v49  ;;  %v1484_v57 = vpack.c.bf16 %v1121_v50, %v1121_v50  ;;  %vm1078_vm7 = vcmp.ge.f32.partialorder %v1062_v51, 0.0  ;;  %v1094_v58 = vmul.f32 0.2, %v1062_v51  ;;  %v1060_v59 = vadd.f32 %v1867_v52, %v2566_v13  ;;  %v1597_v60 = vpop.f32.mrb[8].mxu1 }
 0x1b3   : > { %1204 = vst.msk [vmem:[%s2577_s15 + $0xc] sm:$0xf] %vm1200_vm2, %v1486_v54  ;;  %v1063_v61 = vadd.f32 %v1868_v55, %v2566_v13  ;;  %v1869_v62 = vadd.high.f32.bf16 %v1630_v56, %v2564_v9  ;;  %v1615_v63 = vpop.f32.mrb[8].mxu0  ;;  %v680_v0 = vpop.f32.mrb[9].mxu1 }
 0x1b4   : > { %1202 = vst.msk [vmem:[%s2577_s15 + $0x4] sm:$0xf] %vm1200_vm2, %v1484_v57  ;;  %v1110_v1 = vsel %vm1078_vm7, %v1062_v51, %v1094_v58  ;;  %vm1076_vm8 = vcmp.ge.f32.partialorder %v1060_v59, 0.0  ;;  %v1092_v2 = vmul.f32 0.2, %v1060_v59  ;;  %v1631_v3 = vadd.f32 %v1615_v63, %v1597_v60  ;;  %v874_v4 = vpop.f32.mrb[9].mxu0 }
 0x1b5   : > { %v1598_v5 = vpop.f32.mrb[10].mxu1  ;;  %v1126_v6 = vmul.f32 1.4142135, %v1110_v1  ;;  %vm1079_vm9 = vcmp.ge.f32.partialorder %v1063_v61, 0.0  ;;  %v1095_v7 = vmul.f32 0.2, %v1063_v61  ;;  %v1061_v8 = vadd.f32 %v1869_v62, %v2566_v13 }
 0x1b6   : > { %v1616_v11 = vpop.f32.mrb[10].mxu0  ;;  %v1108_v9 = vsel %vm1076_vm8, %v1060_v59, %v1092_v2  ;;  %v1870_v12 = vadd.low.f32.bf16 %v1631_v3, %v1822_v53  ;;  %v1632_v14 = vadd.f32 %v874_v4, %v680_v0  ;;  %v683_v16 = vpop.f32.mrb[11].mxu1 }
 0x1b7   : > { %v1633_v15 = vadd.f32 %v1616_v11, %v1598_v5  ;;  %v877_v17 = vpop.f32.mrb[11].mxu0  ;;  %v1489_v18 = vpack.c.bf16 %v1126_v6, %v1126_v6  ;;  %v1124_v19 = vmul.f32 1.4142135, %v1108_v9  ;;  %v1111_v20 = vsel %vm1079_vm9, %v1063_v61, %v1095_v7 }
 0x1b8   : > { %vm1077_vm10 = vcmp.ge.f32.partialorder %v1061_v8, 0.0  ;;  %v1127_v21 = vmul.f32 1.4142135, %v1111_v20  ;;  %v1093_v22 = vmul.f32 0.2, %v1061_v8  ;;  %v1066_v23 = vadd.f32 %v1870_v12, %v2566_v13 }
 0x1b9   : > { %v1871_v24 = vadd.low.f32.bf16 %v1632_v14, %v2571_v28  ;;  %1207 = vst.msk [vmem:[%s2577_s15 + $0x18] sm:$0xf] %vm1200_vm2, %v1489_v18  ;;  %v1487_v25 = vpack.c.bf16 %v1124_v19, %v1124_v19  ;;  %v1872_v27 = vadd.high.f32.bf16 %v1633_v15, %v1822_v53  ;;  %v1634_v29 = vadd.f32 %v877_v17, %v683_v16 }
 0x1ba   : > { %v1490_v30 = vpack.c.bf16 %v1127_v21, %v1127_v21  ;;  %v1109_v31 = vsel %vm1077_vm10, %v1061_v8, %v1093_v22  ;;  %vm1082_vm11 = vcmp.ge.f32.partialorder %v1066_v23, 0.0  ;;  %v1098_v32 = vmul.f32 0.2, %v1066_v23  ;;  %v1601_v33 = vpop.f32.mrb[12].mxu1 }
 0x1bb   : > { %1205 = vst.msk [vmem:[%s2577_s15 + $0x10] sm:$0xf] %vm1200_vm2, %v1487_v25  ;;  %v1125_v34 = vmul.f32 1.4142135, %v1109_v31  ;;  %v1064_v35 = vadd.f32 %v1871_v24, %v2566_v13  ;;  %v1067_v36 = vadd.f32 %v1872_v27, %v2566_v13  ;;  %v1873_v37 = vadd.high.f32.bf16 %v1634_v29, %v2571_v28  ;;  %v1619_v38 = vpop.f32.mrb[12].mxu0  ;;  %v696_v39 = vpop.f32.mrb[13].mxu1 }
 0x1bc   : > { %1208 = vst.msk [vmem:[%s2577_s15 + $0x1c] sm:$0xf] %vm1200_vm2, %v1490_v30  ;;  %v1114_v40 = vsel %vm1082_vm11, %v1066_v23, %v1098_v32  ;;  %v1635_v41 = vadd.f32 %v1619_v38, %v1601_v33  ;;  %v890_v42 = vpop.f32.mrb[13].mxu0  ;;  %v1602_v43 = vpop.f32.mrb[14].mxu1 }
 0x1bd   : > { %v1488_v44 = vpack.c.bf16 %v1125_v34, %v1125_v34  ;;  %v1130_v45 = vmul.f32 1.4142135, %v1114_v40  ;;  %vm1080_vm12 = vcmp.ge.f32.partialorder %v1064_v35, 0.0  ;;  %v1096_v46 = vmul.f32 0.2, %v1064_v35  ;;  %v1620_v47 = vpop.f32.mrb[14].mxu0 }
 0x1be   : > { %vm1083_vm13 = vcmp.ge.f32.partialorder %v1067_v36, 0.0  ;;  %v1099_v48 = vmul.f32 0.2, %v1067_v36  ;;  %v1065_v49 = vadd.f32 %v1873_v37, %v2566_v13  ;;  %v1874_v28 = vadd.low.f32.bf16 %v1635_v41, %v1832_v26  ;;  %v699_v50 = vpop.f32.mrb[15].mxu1  ;;  %v893_v51 = vpop.f32.mrb[15].mxu0 }
 0x1bf   : > { %1206 = vst.msk [vmem:[%s2577_s15 + $0x14] sm:$0xf] %vm1200_vm2, %v1488_v44  ;;  %v1493_v52 = vpack.c.bf16 %v1130_v45, %v1130_v45  ;;  %v1112_v53 = vsel %vm1080_vm12, %v1064_v35, %v1096_v46  ;;  %v1636_v54 = vadd.f32 %v890_v42, %v696_v39  ;;  %v1637_v55 = vadd.f32 %v1620_v47, %v1602_v43 }
 0x1c0   : > { %v1128_v56 = vmul.f32 1.4142135, %v1112_v53  ;;  %v1115_v57 = vsel %vm1083_vm13, %v1067_v36, %v1099_v48  ;;  %vm1081_vm14 = vcmp.ge.f32.partialorder %v1065_v49, 0.0  ;;  %v1097_v58 = vmul.f32 0.2, %v1065_v49 }
 0x1c1   : > { %1211 = vst.msk [vmem:[%s2577_s15 + $0x28] sm:$0xf] %vm1200_vm2, %v1493_v52  ;;  %v1131_v59 = vmul.f32 1.4142135, %v1115_v57  ;;  %v1070_v60 = vadd.f32 %v1874_v28, %v2566_v13  ;;  %v1875_v61 = vadd.low.f32.bf16 %v1636_v54, %v2591_v10  ;;  %v1876_v62 = vadd.high.f32.bf16 %v1637_v55, %v1832_v26 }
 0x1c2   : > { %v1491_v63 = vpack.c.bf16 %v1128_v56, %v1128_v56  ;;  %v1113_v0 = vsel %vm1081_vm14, %v1065_v49, %v1097_v58  ;;  %v1638_v1 = vadd.f32 %v893_v51, %v699_v50 }
 0x1c3   : > { %v1494_v2 = vpack.c.bf16 %v1131_v59, %v1131_v59  ;;  %v1129_v3 = vmul.f32 1.4142135, %v1113_v0  ;;  %vm1086_vm15 = vcmp.ge.f32.partialorder %v1070_v60, 0.0  ;;  %v1102_v4 = vmul.f32 0.2, %v1070_v60 }
 0x1c4   : > { %1209 = vst.msk [vmem:[%s2577_s15 + $0x20] sm:$0xf] %vm1200_vm2, %v1491_v63  ;;  %v1068_v5 = vadd.f32 %v1875_v61, %v2566_v13  ;;  %v1071_v6 = vadd.f32 %v1876_v62, %v2566_v13  ;;  %v1877_v7 = vadd.high.f32.bf16 %v1638_v1, %v2591_v10 }
 0x1c5   : > { %1212 = vst.msk [vmem:[%s2577_s15 + $0x2c] sm:$0xf] %vm1200_vm2, %v1494_v2  ;;  %v1492_v8 = vpack.c.bf16 %v1129_v3, %v1129_v3  ;;  %v1118_v11 = vsel %vm1086_vm15, %v1070_v60, %v1102_v4 }
 0x1c6   : > { %v1134_v9 = vmul.f32 1.4142135, %v1118_v11  ;;  %vm1084_vm0 = vcmp.ge.f32.partialorder %v1068_v5, 0.0  ;;  %v1100_v12 = vmul.f32 0.2, %v1068_v5  ;;  %vm1087_vm1 = vcmp.ge.f32.partialorder %v1071_v6, 0.0 }
 0x1c7   : > { %1210 = vst.msk [vmem:[%s2577_s15 + $0x24] sm:$0xf] %vm1200_vm2, %v1492_v8  ;;  %v1103_v14 = vmul.f32 0.2, %v1071_v6  ;;  %v1069_v15 = vadd.f32 %v1877_v7, %v2566_v13 }
 0x1c8   : > { %v1497_v10 = vpack.c.bf16 %v1134_v9, %v1134_v9  ;;  %v1116_v16 = vsel %vm1084_vm0, %v1068_v5, %v1100_v12 }
 0x1c9   : > { %v1132_v17 = vmul.f32 1.4142135, %v1116_v16  ;;  %v1119_v18 = vsel %vm1087_vm1, %v1071_v6, %v1103_v14  ;;  %vm1085_vm3 = vcmp.ge.f32.partialorder %v1069_v15, 0.0  ;;  %v1101_v19 = vmul.f32 0.2, %v1069_v15 }
 0x1ca   : > { %1215 = vst.msk [vmem:[%s2577_s15 + $0x38] sm:$0xf] %vm1200_vm2, %v1497_v10  ;;  %v1135_v20 = vmul.f32 1.4142135, %v1119_v18 }
 0x1cb   : > { %v1495_v21 = vpack.c.bf16 %v1132_v17, %v1132_v17  ;;  %v1117_v22 = vsel %vm1085_vm3, %v1069_v15, %v1101_v19 }
 0x1cc   : > { %v1498_v13 = vpack.c.bf16 %v1135_v20, %v1135_v20  ;;  %v1133_v23 = vmul.f32 1.4142135, %v1117_v22 }
 0x1cd   : > { %1213 = vst.msk [vmem:[%s2577_s15 + $0x30] sm:$0xf] %vm1200_vm2, %v1495_v21 }
 0x1ce   : > { %1216 = vst.msk [vmem:[%s2577_s15 + $0x3c] sm:$0xf] %vm1200_vm2, %v1498_v13  ;;  %v1496_v24 = vpack.c.bf16 %v1133_v23, %v1133_v23 }
 0x1d0   : > { %1214 = vst.msk [vmem:[%s2577_s15 + $0x34] sm:$0xf] %vm1200_vm2, %v1496_v24 }
 0x1d1   : > { %2009 = shalt.err (!%p2006_p13)
}
 0x1d2   : > { %s2010_s27 = scalar_lea.hbm %s2631_s18, 1024  ;;  %s2014_s0 = scalar_lea.hbm %s2764_s30, 4096 }
 0x1d3   : > { %p2011_p0 = scmp.ne.s32.totalorder %s2631_s18, %s2010_s27  ;;  %p2015_p1 = scmp.lt.u32.totalorder %s2631_s18, %s2764_s30 }
 0x1d4   : > { %p2016_p6 = scmp.lt.u32.totalorder %s2014_s0, %s2010_s27  ;;  %p2018_p4 = scmp.lt.u32.totalorder %s2010_s27, %s2631_s18 }
 0x1d5   : > { %p2012_p7 = pnand %p2011_p0, %p2765_p2 }
 0x1d6   : > { %p2017_p5 = por %p2016_p6, %p2015_p1 }
 0x1d7   : > { %p2013_p10 = pneg %p2012_p7 }
 0x1d8   : > { %p2019_p12 = por %p2018_p4, %p2017_p5 }
 0x1da   : > { %p2020_p9 = pnand %p2019_p12, %p2013_p10 }
 0x1dc   : > { %2023 = shalt.err (!%p2020_p9)
}
 0x1dd   : > { %s2140_s1 = smov 64   ;;  %s2141_s4 = smov 4  }
 0x1de   : > { %1675 = dma.vmem_to_hbm [thread:$0]  (%p2765_p2), %s2633_s8, 1024, %s2631_s18, %s2641_s26, %s2140_s1, %s2140_s1, %s2141_s4  }
 0x1df PF: > { %s2766_s23 = sld [smem:[#allocation18_spill]]  ;;  %s2767_s22 = sld [smem:[#allocation15_spill]] }
 0x1e0   : > { %s2768_s12 = sld [smem:[#allocation20_spill]] }
 0x1e5   : > { %p1698_p11 = scmp.ge.s32.totalorder %s2766_s23, 2  ;;  %s1248_s6 = sand.u32 1, %s2767_s22  }
 0x1e6   : > { %p2769_p3 = scmp.ne.s32.totalorder %s2768_s12, 0  ;;  %s1249_s5 = scalar_lea.sflag [#allocation4], %s1248_s6 }
 0x1e8   : > { %p1692_p8 = pnand %p1698_p11, %p2769_p3 }
 0x1ea   : > { %2085 = dma.done.wait (!%p1692_p8), %s1249_s5, 1024  }
 0x1eb   : > { %2087 = vsyncadd (!%p1692_p8), %s1249_s5, 4294966272  ;;  %s21_s9 = sadd.s32 1, %s2766_s23   ;;  %s2770_s21 = sld [smem:[#allocation17_spill]] }
 0x1ec   : > { %p18_p13 = scmp.ge.s32.totalorder %s21_s9, 6   ;;  %s2771_s23 = sld [smem:[#allocation21_spill]] }
 0x1ed   : > { %s2772_s15 = smov %s2094_s16  ;;  %s2773_s16 = smov %s2098_s17 }
 0x1ee   : > { %s2774_s17 = smov %s2415_s25  ;;  %s2775_s18 = smov %s2106_s19 }
 0x1ef   : > { %s2776_s19 = smov %s2110_s20  ;;  %s2777_s20 = smov %s2410_s14 }
 0x1f0   : > { %s2778_s22 = smov %s2126_s24  ;;  %s2779_s24 = smov %s2786_s13 }
 0x1f1   : > { %s2780_s25 = smov %s21_s9  ;;  %20 = sbr.rel (!%p18_p13) target bundleno = 15 (0xf), region = 112 }
 0x1f8   :  { %1254 = vsyncpa [#allocation3], 1 }
 0x1f9   :  { %1256 = vsyncpa [#allocation3 + $0x1], 1 }
 0x1fa   :  { %1257 = vsyncpa [#allocation6], 1 }
 0x1fb   :  { %1258 = vsyncpa [#allocation4], 1 }
 0x1fc   :  { %1260 = vsyncpa [#allocation4 + $0x1], 1 }

</bundles_post_ra>
